<compile_context>
chip_gen: v5e
topology: v5e:2x2
jax: 0.10.0
libtpu: 0.0.40
codegen_flags: <defaults>
</compile_context>

<pallas_src>
import jax
import jax.numpy as jnp
from jax import lax
from jax.experimental import pallas as pl
from jax.experimental.pallas import tpu as pltpu


# Target size of one x/out block.  With default double buffering this keeps
# the whole pipeline well under the default 32 MiB scoped-VMEM limit on all
# TPU generations (including v7x with 64 MiB physical VMEM), while blocks are
# large enough (>=512 lanes) to run near the HBM roofline for a streaming add.
_BLOCK_TARGET_BYTES = 2 * 1024 * 1024

# Largest embedding table (double-buffered) we keep resident in VMEM for the
# fused-gather path.
_MAX_RESIDENT_TABLE_BYTES = 8 * 1024 * 1024


def _choose_blocks_2d(rows, cols, itemsize, target_bytes=_BLOCK_TARGET_BYTES):
    """Largest lane-dense (row_block, col_block) with block bytes ~<= target.

    row_block is a multiple of 8 (or the full row count); col_block is a
    multiple of 128 (or the full column count), satisfying the (8, 128)
    BlockSpec constraint.
    """
    min_rows = rows if rows < 8 else 8
    if min_rows * cols * itemsize <= target_bytes:
        col_block = cols  # full extent is always legal
    else:
        col_block = max(128, (target_bytes // (min_rows * itemsize)) // 128 * 128)
    row_block = max(min_rows, (target_bytes // (col_block * itemsize)) // 8 * 8)
    if row_block >= rows:
        row_block = rows  # full extent is always legal
    return row_block, col_block


def _choose_gather_row_block(n_rows, row_bytes, target_bytes=_BLOCK_TARGET_BYTES):
    """Row block for the fused-gather path.

    The same value is also the lane extent of the (1, row_block) index block,
    so it must be a multiple of 128 or the full number of rows.
    """
    r = max(128, (target_bytes // max(row_bytes, 1)) // 128 * 128)
    return n_rows if r >= n_rows else int(r)


# ---------------------------------------------------------------------------
# Kernels
# ---------------------------------------------------------------------------


def _add_kernel(x_ref, e_ref, o_ref):
    # e_ref is either (row_block, col_block) or (1, col_block); the latter
    # broadcasts over the sublane dim (PyTorch's `x + emb[None]` broadcast).
    o_ref[...] = x_ref[...] + e_ref[...]


def _gather_add_kernel(t_ref, x_ref, tab_ref, o_ref):
    # t_ref:   (1, row_block) int32   -- per-row indices into the table
    # x_ref:   (row_block, C)
    # tab_ref: (max_tsz, C)           -- full table, resident in VMEM
    idx = t_ref[0, :]
    emb = jnp.take(tab_ref[...], idx, axis=0, mode="clip")  # (row_block, C)
    o_ref[...] = x_ref[...] + emb


# ---------------------------------------------------------------------------
# pallas_call wrappers
# ---------------------------------------------------------------------------


def _add_2d(x2, e2):
    """out = x2 + e2, where e2 is (rows, cols) or (1, cols) (sublane bcast)."""
    rows, cols = x2.shape
    row_block, col_block = _choose_blocks_2d(rows, cols, x2.dtype.itemsize)
    e_broadcast = e2.shape[0] == 1
    e_block = (1, col_block) if e_broadcast else (row_block, col_block)
    e_map = (lambda i, j: (0, j)) if e_broadcast else (lambda i, j: (i, j))
    grid = (pl.cdiv(rows, row_block), pl.cdiv(cols, col_block))
    return pl.pallas_call(
        _add_kernel,
        out_shape=jax.ShapeDtypeStruct((rows, cols), x2.dtype),
        grid_spec=pltpu.PrefetchScalarGridSpec(
            num_scalar_prefetch=0,
            grid=grid,
            in_specs=[
                pl.BlockSpec((row_block, col_block), lambda i, j: (i, j)),
                pl.BlockSpec(e_block, e_map),
            ],
            out_specs=pl.BlockSpec((row_block, col_block), lambda i, j: (i, j)),
        ),
        compiler_params=pltpu.CompilerParams(
            dimension_semantics=("parallel", "parallel")),
    )(x2, e2)


def _gather_add(times_row, x2, table):
    """out[i] = x2[i] + table[times_row[0, i]], gather fused in-kernel."""
    n_rows, c = x2.shape
    row_block = _choose_gather_row_block(n_rows, c * x2.dtype.itemsize)
    grid = (pl.cdiv(n_rows, row_block),)
    return pl.pallas_call(
        _gather_add_kernel,
        out_shape=jax.ShapeDtypeStruct((n_rows, c), x2.dtype),
        grid_spec=pltpu.PrefetchScalarGridSpec(
            num_scalar_prefetch=0,
            grid=grid,
            in_specs=[
                pl.BlockSpec((1, row_block), lambda i: (0, i)),          # indices
                pl.BlockSpec((row_block, c), lambda i: (i, 0)),          # x rows
                pl.BlockSpec((table.shape[0], table.shape[1]),
                             lambda i: (0, 0)),                          # resident table
            ],
            out_specs=pl.BlockSpec((row_block, c), lambda i: (i, 0)),
        ),
        compiler_params=pltpu.CompilerParams(
            dimension_semantics=("parallel",)),
    )(times_row, x2, table)


# ---------------------------------------------------------------------------
# Public forward
# ---------------------------------------------------------------------------


def learned_positional_embeddings(x, embeddings_tc, offset=0, times_bt=None):
    """Equivalent of LearnedPositionalEmbeddings.forward.

    x:             (B, T, C)
    embeddings_tc: (max_tsz, C)
    offset:        int, used when times_bt is None
    times_bt:      optional (B, T) integer indices into the table

    Output dtype follows x: the table is cast to x.dtype once in the wrapper
    (usual mixed-precision convention; differs from torch's f32 promotion when
    x is bf16 and the parameter is f32).
    """
    B, T, C = x.shape
    max_tsz = embeddings_tc.shape[0]
    table = embeddings_tc.astype(x.dtype)

    if times_bt is None:
        # emb broadcasts over batch: flatten to (B, T*C) so the add's last dim
        # is lane-dense even when C < 128.
        emb = lax.dynamic_slice(table, (offset, 0), (T, C))
        out2 = _add_2d(x.reshape(B, T * C), emb.reshape(1, T * C))
        return out2.reshape(B, T, C)

    n = B * T
    table_bytes = table.size * table.dtype.itemsize
    row_bytes = C * x.dtype.itemsize
    fused_ok = (2 * table_bytes <= _MAX_RESIDENT_TABLE_BYTES
                and 128 * row_bytes <= 2 * _BLOCK_TARGET_BYTES)

    if fused_ok:
        # Fused path: whole table resident in VMEM, row gather inside the
        # kernel -> ~2*B*T*C HBM bytes instead of ~4*B*T*C.
        try:
            x2 = x.reshape(n, C)
            times_row = times_bt.reshape(1, n).astype(jnp.int32)
            out2 = _gather_add(times_row, x2, table)
            return out2.reshape(B, T, C)
        except Exception:
            # In-kernel row gather may not lower on every backend/jax version;
            # fall back to the unfused path below (still lane-dense add).
            pass

    # Unfused fallback: gather in XLA (materializes (B, T, C) in HBM), then a
    # lane-dense elementwise add in the kernel.
    # TODO(synk): for tables too large to keep resident in VMEM, a manual-DMA
    # row gather (pl.ANY table + per-row async copies) would avoid the extra
    # HBM pass over the gathered embeddings.
    emb_btc = jnp.take(table, times_bt, axis=0)  # (B, T, C); OOB indices clamp
    out2 = _add_2d(x.reshape(B, T * C), emb_btc.reshape(B, T * C))
    return out2.reshape(B, T, C)


if __name__ == "__main__":
    # Module hyper-params (small, consistent with the forward semantics).
    max_tsz, embed_dim = 16, 32
    B, T = 2, 8

    key = jax.random.PRNGKey(0)
    k_emb, k_x, k_t = jax.random.split(key, 3)

    # Deterministic synthetic parameter init (weight_init='normal').
    embeddings_tc = 0.02 * jax.random.normal(k_emb, (max_tsz, embed_dim), jnp.float32)
    x = jax.random.normal(k_x, (B, T, embed_dim), jnp.float32)
    times_bt = jax.random.randint(k_t, (B, T), 0, max_tsz, jnp.int32)

    # Path 1: offset-based positional embedding (times_bt is None).
    offset = 3
    out1 = jax.block_until_ready(
        learned_positional_embeddings(x, embeddings_tc, offset=offset))
    ref1 = x + embeddings_tc[None, offset:offset + T]
    assert out1.shape == x.shape and out1.dtype == x.dtype
    assert jnp.allclose(out1, ref1, atol=1e-6, rtol=1e-6)

    # Path 2: explicit per-(batch, time) indices (fused in-kernel gather).
    out2 = jax.block_until_ready(
        learned_positional_embeddings(x, embeddings_tc, times_bt=times_bt))
    ref2 = x + embeddings_tc[times_bt]
    assert out2.shape == x.shape and out2.dtype == x.dtype
    assert jnp.allclose(out2, ref2, atol=1e-6, rtol=1e-6)

    print("KERNEL_OK")
</pallas_src>

<mosaic_0001>
module attributes {stable_mosaic.version = 11 : i64} {
  func.func @_add_kernel(%arg0: i32, %arg1: i32, %arg2: memref<2x256xf32, #tpu.memory_space<vmem>>, %arg3: memref<1x256xf32, #tpu.memory_space<vmem>>, %arg4: memref<2x256xf32, #tpu.memory_space<vmem>>) attributes {dimension_semantics = [#tpu.dimension_semantics<parallel>, #tpu.dimension_semantics<parallel>], iteration_bounds = array<i64: 1, 1>, scalar_prefetch = 0 : i64, scratch_operands = 0 : i64, tpu.core_type = #tpu.core_type<tc>, window_params = [{transform_indices = @transform_0, window_bounds = array<i64: 2, 256>}, {transform_indices = @transform_1, window_bounds = array<i64: 1, 256>}, {transform_indices = @transform_2, window_bounds = array<i64: 2, 256>}]} {
    %c0 = arith.constant 0 : index
    %c0_0 = arith.constant 0 : index
    %0 = vector.load %arg2[%c0, %c0_0] : memref<2x256xf32, #tpu.memory_space<vmem>>, vector<2x256xf32>
    %c0_1 = arith.constant 0 : index
    %c0_2 = arith.constant 0 : index
    %1 = vector.load %arg3[%c0_1, %c0_2] : memref<1x256xf32, #tpu.memory_space<vmem>>, vector<1x256xf32>
    %2 = vector.broadcast %1 : vector<1x256xf32> to vector<2x256xf32>
    %3 = arith.addf %0, %2 : vector<2x256xf32>
    %c0_3 = arith.constant 0 : index
    %c0_4 = arith.constant 0 : index
    %4 = vector.load %arg4[%c0_3, %c0_4] : memref<2x256xf32, #tpu.memory_space<vmem>>, vector<2x256xf32>
    tpu.vector_store %arg4[%c0_3, %c0_4], %3 {strides = array<i32>} : memref<2x256xf32, #tpu.memory_space<vmem>>, vector<2x256xf32>,
    return
  }
  func.func @transform_0(%arg0: i32, %arg1: i32) -> (i32, i32) {
    %c0_i32 = arith.constant 0 : i32
    return %arg0, %arg1 : i32, i32
  }
  func.func @transform_1(%arg0: i32, %arg1: i32) -> (i32, i32) {
    %c0_i32 = arith.constant 0 : i32
    %c0_i32_0 = arith.constant 0 : i32
    return %c0_i32, %arg1 : i32, i32
  }
  func.func @transform_2(%arg0: i32, %arg1: i32) -> (i32, i32) {
    %c0_i32 = arith.constant 0 : i32
    return %arg0, %arg1 : i32, i32
  }
}

</mosaic_0001>

<bundles_post_ra>
// kernel: tpu_custom_call.1
= control target key start
LH: loop header
LB: loop body
LE: loop exit
PB: predicated region body
PF: predicated region fallthrough
CT: control target
= control target key end

     0   :  { %7 = vsyncpa [#allocation3], 0  ;;  %s177_s0 = inlined_call_operand.hbm [shape: f32[2,256], index: 0, kind: input, shape index: {}]   ;;  %s178_s1 = inlined_call_operand.hbm [shape: f32[1,256], index: 1, kind: input, shape index: {}]   ;;  %s179_s2 = inlined_call_operand.hbm [shape: f32[2,256], index: 2, kind: output, shape index: {}]  }
   0x1   :  { %8 = vsyncpa [#allocation6], 0 }
   0x2   :  { %9 = vsyncpa [#allocation4], 0  ;;  %s15_s11 = sshll.u32 %s177_s0, 4  ;;  %s150_s12 = smov [#allocation2]   ;;  %s16_s11 = int_to_ptr.hbm [resolvable:$true] %s15_s11 }
   0x3   :  { %s17_s13 = sshll.u32 %s150_s12, 4  ;;  %s26_s16 = sshll.u32 %s178_s1, 4  ;;  %s18_s13 = int_to_ptr.vmem [resolvable:$true] %s17_s13  ;;  %s27_s16 = int_to_ptr.hbm [resolvable:$true] %s26_s16 }
   0x4   :  { %20 = dma.hbm_to_vmem [thread:$0]  %s16_s11, 64, %s18_s13, [#allocation3]  }
   0x5   :  { %s151_s17 = smov [#allocation5]  }
   0x6   :  { %s28_s18 = sshll.u32 %s151_s17, 4  ;;  %s29_s18 = int_to_ptr.vmem [resolvable:$true] %s28_s18 }
   0x7   :  { %31 = dma.hbm_to_vmem [thread:$0]  %s27_s16, 32, %s29_s18, [#allocation6]  }
   0x8   :  { %144 = dma.done.wait [#allocation3], 64  }
   0x9   :  { %145 = vsyncadd [#allocation3], 4294967232 }
   0xa   :  { %146 = dma.done.wait [#allocation6], 32  }
   0xb   :  { %147 = vsyncadd [#allocation6], 4294967264  ;;  %v41_v0 = vld [vmem:[#allocation5] sm:$0x3]  ;;  %vm46_vm0 = vcmask 1041408   ;;  %s152_s0 = smov [#allocation7]  }
   0xc   :  { %v43_v1 = vperm.slane %v41_v0, 0  ;;  %v44_v2 = vperm.slane %v41_v0, 1  ;;  %v40_v3 = vld [vmem:[#allocation2] sm:$0xf]  ;;  %s56_s19 = sshll.u32 %s152_s0, 4  ;;  %s58_s21 = sshll.u32 %s179_s2, 4  ;;  %s57_s19 = int_to_ptr.vmem [resolvable:$true] %s56_s19  ;;  %s59_s21 = int_to_ptr.hbm [resolvable:$true] %s58_s21 }
   0xe   :  { %v45_v4 = vrot.slane %v44_v2, 6 }
  0x10   :  { %v47_v5 = vsel %vm46_vm0, %v43_v1, %v45_v4 }
  0x11   :  { %v49_v6 = vadd.f32 %v47_v5, %v40_v3 }
  0x13   :  { %50 = vst [vmem:[#allocation7] sm:$0xf] %v49_v6 }
  0x14   :  { %61 = dma.vmem_to_hbm [thread:$0]  %s57_s19, 64, %s59_s21, [#allocation4]  }
  0x15   :  { %148 = dma.done.wait [#allocation4], 64  }
  0x16   :  { %149 = vsyncadd [#allocation4], 4294967232 }
  0x17   :  { %66 = vsyncpa [#allocation3], 1 }
  0x18   :  { %67 = vsyncpa [#allocation6], 1 }
  0x19   :  { %68 = vsyncpa [#allocation4], 1 }

</bundles_post_ra>
